<compile_context>
chip_gen: v5e
topology: v5e:2x2
jax: 0.10.0
libtpu: 0.0.40
codegen_flags: <defaults>
</compile_context>

<pallas_src>
import jax
import jax.numpy as jnp
from jax.experimental import pallas as pl
from jax.experimental.pallas import tpu as pltpu

HID = 16   # hidden width of both hidden layers
KAUG = 8   # augmented layer-1 contraction dim (x0, x1, ones, 5 zero rows)


def mlp_kernel(x_ref, w1_ref, w2_ref, b2_ref, w3_ref, b3_ref, o_ref):
    x_aug = x_ref[...]                                  # [8, TB] f32 (batch in lanes)

    # Layer 1: Linear(2,16) + bias (folded via the ones row) + ReLU — MXU.
    h1 = jnp.dot(w1_ref[...], x_aug, preferred_element_type=jnp.float32)   # [16, TB]
    h1 = jnp.maximum(h1, 0.0)
    # TODO(synk): training-mode Dropout(0.2) (random mask + 1/0.8 scaling) not
    # implemented; eval-mode (identity) semantics are used.

    # Layer 2: Linear(16,16) + ReLU — MXU; bias stays a cheap VPU add.
    h2 = jnp.dot(w2_ref[...], h1, preferred_element_type=jnp.float32) + b2_ref[...]
    h2 = jnp.maximum(h2, 0.0)                           # [16, TB]

    # Layer 3: Linear(16,1) + Sigmoid — MXU dot, ops only on the [1, TB] row.
    logits = jnp.dot(w3_ref[...], h2, preferred_element_type=jnp.float32) + b3_ref[...]
    o_ref[...] = jax.nn.sigmoid(logits)                 # lane-dense [1, TB] store


def binary_classifier_forward(x, params, *, tb=65536):
    """x: [B, 2] float32. params: dict of w1,b1,w2,b2,w3,b3 (see init_params)."""
    B, F = x.shape
    assert F == 2, F

    tb = max(128, (tb // 128) * 128)                    # lane-dense tile size
    Bp = ((B + 127) // 128) * 128                       # lane-align batch only
    tb_eff = min(tb, Bp)

    # Augmented, transposed input [8, Bp]: rows 0-1 = features, row 2 = 1.0
    # (folds b1 into the layer-1 matmul), rows 3-7 = 0.  One fused host copy;
    # the kernel stays VALU-bound so the extra HBM traffic is in the noise.
    x_aug = jnp.concatenate(
        [x.T.astype(jnp.float32),
         jnp.ones((1, B), jnp.float32),
         jnp.zeros((KAUG - 3, B), jnp.float32)], axis=0)          # [8, B]
    if Bp != B:
        x_aug = jnp.pad(x_aug, ((0, 0), (0, Bp - B)))             # [8, Bp]

    # Kernel-side parameter layout: transposed weights, features in sublanes.
    w1aug = jnp.concatenate(
        [params["w1"].T, params["b1"].T, jnp.zeros((HID, KAUG - 3), jnp.float32)],
        axis=1)                                          # [16, 8]
    w2T = params["w2"].T                                 # [16, 16]
    b2T = params["b2"].T                                 # [16, 1]
    w3T = params["w3"].T                                 # [1, 16]
    b3 = params["b3"]                                    # [1, 1]

    resident = lambda a: pl.BlockSpec(a.shape, lambda i, _a=a: (0,) * _a.ndim)
    grid = (pl.cdiv(Bp, tb_eff),)                        # partial last block OK

    outT = pl.pallas_call(
        mlp_kernel,
        out_shape=jax.ShapeDtypeStruct((1, Bp), jnp.float32),
        grid=grid,
        in_specs=[
            pl.BlockSpec((KAUG, tb_eff), lambda i: (0, i)),   # x tile, batch in lanes
            resident(w1aug), resident(w2T), resident(b2T),
            resident(w3T), resident(b3),
        ],
        out_specs=pl.BlockSpec((1, tb_eff), lambda i: (0, i)),
        # Batch axis is independent -> parallel (lets v7x shard it across TCs).
        # pltpu.CORE_PARALLEL is a v7x-only option worth trying when grid > 1.
        compiler_params=pltpu.CompilerParams(
            dimension_semantics=("parallel",)),
        cost_estimate=pl.CostEstimate(
            flops=2 * Bp * (HID * KAUG + HID * HID + HID),
            transcendentals=Bp,
            bytes_accessed=Bp * (KAUG * 4 + 4)),
    )(x_aug, w1aug, w2T, b2T, w3T, b3)

    return outT[:, :B].T                                 # [B, 1]


def init_params(key):
    """Deterministic init mirroring nn.Linear's U(-1/sqrt(fan_in), 1/sqrt(fan_in))."""
    dims = [(2, 16), (16, 16), (16, 1)]
    params = {}
    for i, (fan_in, fan_out) in enumerate(dims, start=1):
        key, kw, kb = jax.random.split(key, 3)
        bound = 1.0 / (fan_in ** 0.5)
        # stored as [in, out] so the math is x @ W (== PyTorch x @ W.T with W[out,in])
        params[f"w{i}"] = jax.random.uniform(
            kw, (fan_in, fan_out), jnp.float32, minval=-bound, maxval=bound)
        params[f"b{i}"] = jax.random.uniform(
            kb, (1, fan_out), jnp.float32, minval=-bound, maxval=bound)
    return params


def reference_forward(x, params):
    h1 = jnp.maximum(x @ params["w1"] + params["b1"], 0.0)
    h2 = jnp.maximum(h1 @ params["w2"] + params["b2"], 0.0)
    return jax.nn.sigmoid(h2 @ params["w3"] + params["b3"])


if __name__ == "__main__":
    key = jax.random.PRNGKey(0)
    key, kx = jax.random.split(key)
    B = 8
    x = jax.random.normal(kx, (B, 2), jnp.float32)
    params = init_params(key)

    out = jax.block_until_ready(binary_classifier_forward(x, params))
    ref = reference_forward(x, params)

    assert out.shape == (B, 1), out.shape
    assert jnp.allclose(out, ref, atol=1e-5, rtol=1e-5), "mismatch vs reference"
    print("KERNEL_OK")
</pallas_src>

<mosaic_0001>
module attributes {stable_mosaic.version = 11 : i64} {
  func.func @mlp_kernel(%arg0: i32, %arg1: memref<8x128xf32, #tpu.memory_space<vmem>>, %arg2: memref<16x8xf32, #tpu.memory_space<vmem>>, %arg3: memref<16x16xf32, #tpu.memory_space<vmem>>, %arg4: memref<16x1xf32, #tpu.memory_space<vmem>>, %arg5: memref<1x16xf32, #tpu.memory_space<vmem>>, %arg6: memref<1x1xf32, #tpu.memory_space<vmem>>, %arg7: memref<1x128xf32, #tpu.memory_space<vmem>>) attributes {dimension_semantics = [#tpu.dimension_semantics<parallel>], iteration_bounds = array<i64: 1>, scalar_prefetch = 0 : i64, scratch_operands = 0 : i64, tpu.core_type = #tpu.core_type<tc>, window_params = [{transform_indices = @transform_0, window_bounds = array<i64: 8, 128>}, {pipeline_mode = #tpu.pipeline_mode<synchronous>, transform_indices = @transform_1, window_bounds = array<i64: 16, 8>}, {pipeline_mode = #tpu.pipeline_mode<synchronous>, transform_indices = @transform_2, window_bounds = array<i64: 16, 16>}, {pipeline_mode = #tpu.pipeline_mode<synchronous>, transform_indices = @transform_3, window_bounds = array<i64: 16, 1>}, {pipeline_mode = #tpu.pipeline_mode<synchronous>, transform_indices = @transform_4, window_bounds = array<i64: 1, 16>}, {pipeline_mode = #tpu.pipeline_mode<synchronous>, transform_indices = @transform_5, window_bounds = array<i64: 1, 1>}, {transform_indices = @transform_6, window_bounds = array<i64: 1, 128>}]} {
    %c0 = arith.constant 0 : index
    %c0_0 = arith.constant 0 : index
    %0 = vector.load %arg1[%c0, %c0_0] : memref<8x128xf32, #tpu.memory_space<vmem>>, vector<8x128xf32>
    %c0_1 = arith.constant 0 : index
    %c0_2 = arith.constant 0 : index
    %1 = vector.load %arg2[%c0_1, %c0_2] : memref<16x8xf32, #tpu.memory_space<vmem>>, vector<16x8xf32>
    %cst = arith.constant dense<0.000000e+00> : vector<16x128xf32>
    %2 = tpu.matmul %1, %0, %cst {dimension_numbers = #tpu.dot_dimension_numbers<[1], [0], [0], [1], [0, 0, 1, 1], [], []>} : vector<16x8xf32>, vector<8x128xf32>, vector<16x128xf32> -> vector<16x128xf32>
    %cst_3 = arith.constant 0.000000e+00 : f32
    %3 = vector.broadcast %cst_3 : f32 to vector<16x128xf32>
    %4 = arith.maximumf %2, %3 : vector<16x128xf32>
    %c0_4 = arith.constant 0 : index
    %c0_5 = arith.constant 0 : index
    %5 = vector.load %arg3[%c0_4, %c0_5] : memref<16x16xf32, #tpu.memory_space<vmem>>, vector<16x16xf32>
    %cst_6 = arith.constant dense<0.000000e+00> : vector<16x128xf32>
    %6 = tpu.matmul %5, %4, %cst_6 {dimension_numbers = #tpu.dot_dimension_numbers<[1], [0], [0], [1], [0, 0, 1, 1], [], []>} : vector<16x16xf32>, vector<16x128xf32>, vector<16x128xf32> -> vector<16x128xf32>
    %c0_7 = arith.constant 0 : index
    %c0_8 = arith.constant 0 : index
    %7 = vector.load %arg4[%c0_7, %c0_8] : memref<16x1xf32, #tpu.memory_space<vmem>>, vector<16x1xf32>
    %8 = vector.broadcast %7 : vector<16x1xf32> to vector<16x128xf32>
    %9 = arith.addf %6, %8 : vector<16x128xf32>
    %cst_9 = arith.constant 0.000000e+00 : f32
    %10 = vector.broadcast %cst_9 : f32 to vector<16x128xf32>
    %11 = arith.maximumf %9, %10 : vector<16x128xf32>
    %c0_10 = arith.constant 0 : index
    %c0_11 = arith.constant 0 : index
    %12 = vector.load %arg5[%c0_10, %c0_11] : memref<1x16xf32, #tpu.memory_space<vmem>>, vector<1x16xf32>
    %cst_12 = arith.constant dense<0.000000e+00> : vector<1x128xf32>
    %13 = tpu.matmul %12, %11, %cst_12 {dimension_numbers = #tpu.dot_dimension_numbers<[1], [0], [0], [1], [0, 0, 1, 1], [], []>} : vector<1x16xf32>, vector<16x128xf32>, vector<1x128xf32> -> vector<1x128xf32>
    %c0_13 = arith.constant 0 : index
    %c0_14 = arith.constant 0 : index
    %14 = vector.load %arg6[%c0_13, %c0_14] : memref<1x1xf32, #tpu.memory_space<vmem>>, vector<1x1xf32>
    %15 = vector.broadcast %14 : vector<1x1xf32> to vector<1x128xf32>
    %16 = arith.addf %13, %15 : vector<1x128xf32>
    %17 = arith.negf %16 : vector<1x128xf32>
    %18 = math.exp %17 : vector<1x128xf32>
    %cst_15 = arith.constant 1.000000e+00 : f32
    %19 = vector.broadcast %cst_15 : f32 to vector<1x128xf32>
    %20 = arith.addf %19, %18 : vector<1x128xf32>
    %21 = arith.divf %19, %20 : vector<1x128xf32>
    %c0_16 = arith.constant 0 : index
    %c0_17 = arith.constant 0 : index
    %22 = vector.load %arg7[%c0_16, %c0_17] : memref<1x128xf32, #tpu.memory_space<vmem>>, vector<1x128xf32>
    tpu.vector_store %arg7[%c0_16, %c0_17], %21 {strides = array<i32>} : memref<1x128xf32, #tpu.memory_space<vmem>>, vector<1x128xf32>,
    return
  }
  func.func @transform_0(%arg0: i32) -> (i32, i32) {
    %c0_i32 = arith.constant 0 : i32
    %c0_i32_0 = arith.constant 0 : i32
    return %c0_i32, %arg0 : i32, i32
  }
  func.func @transform_1(%arg0: i32) -> (i32, i32) {
    %c0_i32 = arith.constant 0 : i32
    %c0_i32_0 = arith.constant 0 : i32
    %c0_i32_1 = arith.constant 0 : i32
    return %c0_i32, %c0_i32_0 : i32, i32
  }
  func.func @transform_2(%arg0: i32) -> (i32, i32) {
    %c0_i32 = arith.constant 0 : i32
    %c0_i32_0 = arith.constant 0 : i32
    %c0_i32_1 = arith.constant 0 : i32
    return %c0_i32, %c0_i32_0 : i32, i32
  }
  func.func @transform_3(%arg0: i32) -> (i32, i32) {
    %c0_i32 = arith.constant 0 : i32
    %c0_i32_0 = arith.constant 0 : i32
    %c0_i32_1 = arith.constant 0 : i32
    return %c0_i32, %c0_i32_0 : i32, i32
  }
  func.func @transform_4(%arg0: i32) -> (i32, i32) {
    %c0_i32 = arith.constant 0 : i32
    %c0_i32_0 = arith.constant 0 : i32
    %c0_i32_1 = arith.constant 0 : i32
    return %c0_i32, %c0_i32_0 : i32, i32
  }
  func.func @transform_5(%arg0: i32) -> (i32, i32) {
    %c0_i32 = arith.constant 0 : i32
    %c0_i32_0 = arith.constant 0 : i32
    %c0_i32_1 = arith.constant 0 : i32
    return %c0_i32, %c0_i32_0 : i32, i32
  }
  func.func @transform_6(%arg0: i32) -> (i32, i32) {
    %c0_i32 = arith.constant 0 : i32
    %c0_i32_0 = arith.constant 0 : i32
    return %c0_i32, %arg0 : i32, i32
  }
}

</mosaic_0001>

<bundles_post_ra>
// kernel: tpu_custom_call.1
= control target key start
LH: loop header
LB: loop body
LE: loop exit
PB: predicated region body
PF: predicated region fallthrough
CT: control target
= control target key end

     0   :  { %s286_s0 = inlined_call_operand.vmem [shape: f32[8,128], index: 0, kind: input, shape index: {}]   ;;  %s287_s1 = inlined_call_operand.vmem [shape: f32[16,8], index: 1, kind: input, shape index: {}]   ;;  %s288_s2 = inlined_call_operand.vmem [shape: f32[16,16], index: 2, kind: input, shape index: {}]   ;;  %s289_s3 = inlined_call_operand.vmem [shape: f32[16,1], index: 3, kind: input, shape index: {}]   ;;  %s290_s4 = inlined_call_operand.vmem [shape: f32[1,16], index: 4, kind: input, shape index: {}]   ;;  %s291_s5 = inlined_call_operand.<no memory space> [shape: f32[1,1], index: 5, kind: input, shape index: {}]   ;;  %s292_s6 = inlined_call_operand.hbm [shape: f32[1,128], index: 6, kind: output, shape index: {}]  }
   0x1   :  { %v11_v0 = vstv %s291_s5 }
   0x2   :  { %12 = vst [vmem:[#allocation2] sm:$0x1] %v11_v0 }
   0x3   :  { %v26_v1 = vld [vmem:[%s286_s0] sm:$0xff]  ;;  %vm29_vm0 = vcmask 64512  }
   0x4   :  { %v27_v2 = vld [vmem:[%s287_s1] sm:$0xff]  ;;  %51 = vmatpush.msra.mxu0 %v26_v1 }
   0x5   :  { %13 = vsyncpa [#allocation4], 0  ;;  %174 = vmatmul.msk.f32.vlgmr.msra.gmra.mxu0 %vm29_vm0, %v27_v2  ;;  %v28_v3 = vld [vmem:[%s287_s1 + $0x8] sm:$0xff]  ;;  %v216_v5 = vmov 0   ;;  %v63_v6 = vld [vmem:[%s289_s3] sm:$0xff]  ;;  %vm75_vm1 = vcmask 130048  }
   0x6   :  { %v64_v4 = vld [vmem:[%s289_s3 + $0x8] sm:$0xff]  ;;  %184 = vset.pattern.permute.xlu0 %v216_v5  ;;  %185 = vset.pattern.permute.xlu1 %v216_v5  ;;  %v61_v11 = vld [vmem:[%s288_s2] sm:$0xff]  ;;  %s165_s13 = sshll.u32 %s292_s6, 4  ;;  %s166_s13 = int_to_ptr.hbm [resolvable:$true] %s165_s13 }
   0x7   :  { %72 = vperm.xlu0 %184, %v64_v4   ;;  %v62_v12 = vld [vmem:[%s288_s2 + $0x8] sm:$0xff]  ;;  %v107_v22 = vld [vmem:[%s290_s4] sm:$0x1]  ;;  %s217_s2 = smov [#allocation3]  }
   0x8   :  { %s163_s4 = sshll.u32 %s217_s2, 4  ;;  %s164_s4 = int_to_ptr.vmem [resolvable:$true] %s163_s4 }
   0x9   :  { %v108_v13 = vld [vmem:[#allocation2] sm:$0x1] }
   0xa   :  { %111 = vperm.xlu1 %185, %v108_v13  }
   0xd   :  { %175 = vmatmul.msk.f32.gmra.mxu0 %vm29_vm0, %v28_v3 }
   0xf   :  { %67 = vperm.xlu0 %184, %v63_v6  }
  0x79   :  { %v73_v14 = vpop.permute.xlu0 %72 }
  0x7c   :  { %v112_v23 = vpop.permute.xlu1 %111 }
  0x7d   :  { %v114_v24 = vperm.slane %v112_v23, 0 }
  0x81   :  { %v68_v15 = vpop.permute.xlu0 %67 }
  0x82   :  { %v53_v7 = vpop.f32.mrf.mxu0 }
  0x83   :  { %v59_v10 = vmax.f32 %v53_v7, 0.0 }
  0x8a   :  { %v56_v8 = vpop.f32.mrf.mxu0 }
  0x8b   :  { %v60_v9 = vmax.f32 %v56_v8, 0.0 }
  0x8d   :  { %96 = vmatpush.msra.mxu1 %v60_v9  ;;  %180 = vmatpush.msra.mxu3 %v60_v9 }
  0x8f   :  { %97 = vmatpush.msra.mxu1 %v59_v10  ;;  %181 = vmatpush.msra.mxu3 %v59_v10 }
  0x90   :  { %176 = vmatmul.msk.f32.vlgmr.msra.gmra.mxu1 %vm75_vm1, %v61_v11  ;;  %177 = vmatmul.msk.f32.vlgmr.msra.gmra.mxu3 %vm75_vm1, %v62_v12 }
 0x10d   :  { %v99_v16 = vpop.f32.mrf.mxu1 }
 0x10e   :  { %v100_v18 = vadd.f32 %v99_v16, %v68_v15 }
 0x110   :  { %v105_v21 = vmax.f32 %v100_v18, 0.0 }
 0x113   :  { %v102_v17 = vpop.f32.mrf.mxu3 }
 0x114   :  { %v103_v19 = vadd.f32 %v102_v17, %v73_v14 }
 0x116   :  { %v106_v20 = vmax.f32 %v103_v19, 0.0 }
 0x118   :  { %132 = vmatpush.msra.mxu2 %v106_v20 }
 0x11a   :  { %133 = vmatpush.msra.mxu2 %v105_v21 }
 0x11b   :  { %178 = vmatmul.msk.f32.vlgmr.msra.gmra.mxu2 %vm75_vm1, %v107_v22 }
 0x19e   :  { %v135_v25 = vpop.f32.mrf.mxu2 }
 0x19f   :  { %v136_v26 = vadd.f32 %v135_v25, %v114_v24 }
 0x1a1   :  { %v179_v27 = vmul.f32 -1.442695, %v136_v26 }
 0x1a3   :  { %186 = vpow2.f32 %v179_v27 }
 0x1a9   :  { %v187_v28 = vpop.eup %186 }
 0x1aa   :  { %v141_v29 = vadd.f32 1.0, %v187_v28 }
 0x1ac   :  { %188 = vrcp.f32 %v141_v29  ;;  %v153_v33 = vand.u32 2147483648, %v141_v29  ;;  %v151_v35 = vand.u32 2147483647, %v141_v29  ;;  %vm147_vm3 = vweird.f32 %v141_v29 }
 0x1ae   :  { %v154_v37 = vor.u32 1.1754944e-38, %v153_v33  ;;  %vm152_vm5 = vcmp.eq.f32.partialorder %v151_v35, 8.507059e+37 }
 0x1b2   :  { %v189_v30 = vpop.eup %188 }
 0x1b3   :  { %v143_v31 = vmul.f32 %v189_v30, %v141_v29  ;;  %vm148_vm2 = vweird.f32 %v189_v30 }
 0x1b4   :  { %vm149_vm4 = vmor %vm147_vm3, %vm148_vm2 }
 0x1b5   :  { %v144_v32 = vsub.f32 1.0, %v143_v31 }
 0x1b7   :  { %v145_v34 = vmul.f32 %v189_v30, %v144_v32 }
 0x1b9   :  { %v146_v36 = vadd.f32 %v189_v30, %v145_v34 }
 0x1bb   :  { %v150_v38 = vsel %vm149_vm4, %v189_v30, %v146_v36 }
 0x1bc   :  { %v155_v39 = vsel %vm152_vm5, %v154_v37, %v150_v38 }
 0x1bd   :  { %157 = vst [vmem:[#allocation3] sm:$0x1] %v155_v39 }
 0x1be   :  { %168 = dma.vmem_to_hbm [thread:$0]  %s164_s4, 16, %s166_s13, [#allocation4]  }
 0x1bf   :  { %214 = dma.done.wait [#allocation4], 16  }
 0x1c0   :  { %215 = vsyncadd [#allocation4], 4294967280 }
 0x1c1   :  { %173 = vsyncpa [#allocation4], 1 }

</bundles_post_ra>
